<compile_context>
chip_gen: v7x
topology: tpu7x:2x2x1
jax: 0.10.0
libtpu: 0.0.40
codegen_flags: <defaults>
</compile_context>

<pallas_src>
import jax
import jax.numpy as jnp
from jax.experimental import pallas as pl
from jax.experimental.pallas import tpu as pltpu

LANE = 128            # vreg lane width
TILE_ROWS = 1024      # rows per tile in the gridded path (1024*128*4B = 512 KiB)
SINGLE_BLOCK_MAX_ROWS = 4096   # <= 2 MiB f32: keep whole array resident, no grid


def identity_kernel(x_ref, o_ref):
    # Whole-tile copy: full-width unmasked loads/stores, no VALU/MXU/XLU work.
    o_ref[...] = x_ref[...]


def null_module_forward(x):
    """PyTorch-equivalent forward of NullModule: returns x unchanged."""
    orig_shape = x.shape
    total = x.size

    # ---- lane-dense 2-D view (pad flat tail up to a multiple of 128) -------
    x_flat = x.reshape(-1)
    pad_elems = (-total) % LANE
    if pad_elems:
        x_flat = jnp.pad(x_flat, (0, pad_elems))
    rows = x_flat.size // LANE
    x2d = x_flat.reshape(rows, LANE)

    cost = pl.CostEstimate(
        flops=0, transcendentals=0, bytes_accessed=2 * x2d.size * x2d.dtype.itemsize
    )

    if rows <= SINGLE_BLOCK_MAX_ROWS:
        # Small input: single block, whole array resident in VMEM, no grid.
        out2d = pl.pallas_call(
            identity_kernel,
            out_shape=jax.ShapeDtypeStruct(x2d.shape, x2d.dtype),
            in_specs=[pl.BlockSpec(memory_space=pltpu.MemorySpace.VMEM)],
            out_specs=pl.BlockSpec(memory_space=pltpu.MemorySpace.VMEM),
            input_output_aliases={0: 0},
            cost_estimate=cost,
        )(x2d)
    else:
        # Large input: 1-D grid of lane-dense (TILE_ROWS, 128) tiles,
        # software-pipelined DMAs, parallel axis for megacore sharding.
        pad_rows = (-rows) % TILE_ROWS
        if pad_rows:
            x2d = jnp.pad(x2d, ((0, pad_rows), (0, 0)))
        rows_padded = x2d.shape[0]
        grid = (rows_padded // TILE_ROWS,)
        out2d = pl.pallas_call(
            identity_kernel,
            out_shape=jax.ShapeDtypeStruct(x2d.shape, x2d.dtype),
            grid=grid,
            in_specs=[pl.BlockSpec((TILE_ROWS, LANE), lambda i: (i, 0))],
            out_specs=pl.BlockSpec((TILE_ROWS, LANE), lambda i: (i, 0)),
            input_output_aliases={0: 0},
            cost_estimate=cost,
            compiler_params=pltpu.CompilerParams(
                dimension_semantics=("parallel",)
            ),
        )(x2d)

    out_flat = out2d.reshape(-1)[:total]
    return out_flat.reshape(orig_shape)


if __name__ == "__main__":
    key = jax.random.PRNGKey(0)

    # Small shape consistent with the UNet context: (N, C, H, W) = (2, 4, 16, 16).
    x = jax.random.normal(key, (2, 4, 16, 16), jnp.float32)
    x_ref = x.copy()  # keep an undonated copy for the correctness check

    # Donate the input so input_output_aliases can elide the HBM writeback.
    forward = jax.jit(null_module_forward, donate_argnums=0)
    y = jax.block_until_ready(forward(x))

    assert y.shape == x_ref.shape, y.shape
    assert y.dtype == x_ref.dtype, y.dtype
    assert bool(jnp.array_equal(y, x_ref)), float(jnp.max(jnp.abs(y - x_ref)))

    # Exercise the non-lane-multiple fallback (padded lane-dense path).
    key2 = jax.random.PRNGKey(1)
    x_tail = jax.random.normal(key2, (3, 5, 7), jnp.float32)  # 105 elems
    x_tail_ref = x_tail.copy()
    y_tail = jax.block_until_ready(
        jax.jit(null_module_forward, donate_argnums=0)(x_tail)
    )
    assert y_tail.shape == x_tail_ref.shape
    assert bool(jnp.array_equal(y_tail, x_tail_ref))

    print("KERNEL_OK")
</pallas_src>

<mosaic_0001>
module attributes {stable_mosaic.version = 11 : i64} {
  func.func @identity_kernel(%arg0: memref<16x128xf32, #tpu.memory_space<vmem>>, %arg1: memref<16x128xf32, #tpu.memory_space<vmem>>) attributes {dimension_semantics = [], scalar_prefetch = 0 : i64, scratch_operands = 0 : i64, tpu.core_type = #tpu.core_type<tc>} {
    %c0 = arith.constant 0 : index
    %c0_0 = arith.constant 0 : index
    %0 = vector.load %arg0[%c0, %c0_0] : memref<16x128xf32, #tpu.memory_space<vmem>>, vector<16x128xf32>
    %c0_1 = arith.constant 0 : index
    %c0_2 = arith.constant 0 : index
    %1 = vector.load %arg1[%c0_1, %c0_2] : memref<16x128xf32, #tpu.memory_space<vmem>>, vector<16x128xf32>
    tpu.vector_store %arg1[%c0_1, %c0_2], %0 {strides = array<i32>} : memref<16x128xf32, #tpu.memory_space<vmem>>, vector<16x128xf32>,
    return
  }
}

</mosaic_0001>

<bundles_post_ra>
// kernel: null_module_forward.1
= control target key start
LH: loop header
LB: loop body
LE: loop exit
PB: predicated region body
PF: predicated region fallthrough
CT: control target
= control target key end

     0   :  { %s38_s0 = inlined_call_operand.vmem [shape: f32[16,128], index: 0, kind: input, shape index: {}, may-alias: {0,1}]   ;;  %s39_s1 = inlined_call_operand.vmem [shape: f32[16,128], index: 1, kind: output, shape index: {}, may-alias: {0,1}]  }
   0x1   :  { %v8_v0 = vld [vmem:[%s38_s0] sm:$0xff]  ;;  %v9_v1 = vld [vmem:[%s38_s0 + $0x8] sm:$0xff] }
   0x2   :  { %10 = vst [vmem:[%s39_s1] sm:$0xff] %v8_v0  ;;  %11 = vst [vmem:[%s39_s1 + $0x8] sm:$0xff] %v9_v1 }

</bundles_post_ra>
